<compile_context>
chip_gen: v6e
topology: v6e:2x2x1
jax: 0.10.0
libtpu: 0.0.40
codegen_flags: <defaults>
</compile_context>

<pallas_src>
import functools

import jax
import jax.numpy as jnp
from jax import lax
from jax.experimental import pallas as pl
from jax.experimental.pallas import tpu as pltpu

_MAX_BLOCK_M = 4096      # row-tile cap; ~17 MiB peak VMEM incl. double buffering
_SINGLE_TILE_MAX = 1024  # below this, one full-extent tile (per-step overhead dominates)
_VMEM_LIMIT_BYTES = 32 * 1024 * 1024  # raise v5e's 16 MiB default; safe on v6e/v7x


def _round_up(x, m):
    return ((x + m - 1) // m) * m


def _mlp_tail(h1, w2_ref, b2_ref, w3_ref, b3_ref):
    """Layers 2 & 3 given post-ReLU f32 h1 of shape (block_m, H).

    Returns a lane-dense (1, block_m) f32 row (token dimension on lanes).
    """
    h1c = h1.astype(w2_ref.dtype)
    h2 = jnp.dot(h1c, w2_ref[...], preferred_element_type=jnp.float32)
    h2 = jnp.maximum(h2 + b2_ref[...], 0.0)
    h2c = h2.astype(w3_ref.dtype)
    # Layer 3 as (1, H) x (block_m, H) contracted over H -> (1, block_m).
    # Keeps the output lane-dense (unmasked stores), avoids an N=1 MXU matmul.
    out = lax.dot_general(
        w3_ref[...], h2c,
        dimension_numbers=(((1,), (1,)), ((), ())),
        preferred_element_type=jnp.float32,
    )
    return out + b3_ref[0]


def _mlp_kernel_xf(x_ref, f_ref, w1x_ref, w1f_ref, b1_ref, w2_ref, b2_ref,
                   w3_ref, b3_ref, o_ref):
    cdt = w1x_ref.dtype
    # First layer split over the (virtually) concatenated input: x@w1[:Dx] + f@w1[Dx:].
    # Row tiles are streamed as f32 and cast here (no wrapper-side astype pass).
    h1 = jnp.dot(x_ref[...].astype(cdt), w1x_ref[...],
                 preferred_element_type=jnp.float32)
    h1 = h1 + jnp.dot(f_ref[...].astype(cdt), w1f_ref[...],
                      preferred_element_type=jnp.float32)
    h1 = jnp.maximum(h1 + b1_ref[...], 0.0)
    o_ref[...] = _mlp_tail(h1, w2_ref, b2_ref, w3_ref, b3_ref).astype(o_ref.dtype)


def _mlp_kernel_x(x_ref, w1_ref, b1_ref, w2_ref, b2_ref, w3_ref, b3_ref, o_ref):
    cdt = w1_ref.dtype
    h1 = jnp.dot(x_ref[...].astype(cdt), w1_ref[...],
                 preferred_element_type=jnp.float32)
    h1 = jnp.maximum(h1 + b1_ref[...], 0.0)
    o_ref[...] = _mlp_tail(h1, w2_ref, b2_ref, w3_ref, b3_ref).astype(o_ref.dtype)


@functools.partial(jax.jit, static_argnames=("compute_dtype",))
def custom_linear_forward(x, params, features=None, *, compute_dtype=jnp.bfloat16):
    """Forward pass of CustomLinear.

    x:        (B, S, input_size) float32
    features: optional (B, S, feature_size) float32
    params:   dict of w1,b1,w2,b2,w3,b3; weights in (in, out) layout, b* as (1, out).
    returns:  (B, S, 1) float32
    """
    B, S, Dx = x.shape
    M = B * S

    # Row tiling. Single full-extent tile for small M; otherwise >=2 grid steps
    # (keeps both v7x TensorCores busy) with block_m a multiple of 128 so the
    # lane-dense (1, block_m) output block stays legal. The last tile may be ragged:
    # safe because every output element depends only on its own row and the wrapper
    # slices the result to [:M].  # TODO(synk): invariant — do not add row-coupled ops.
    if M <= _SINGLE_TILE_MAX:
        block_m = M
    else:
        block_m = min(_MAX_BLOCK_M, _round_up(pl.cdiv(M, 2), 128))
    grid = (pl.cdiv(M, block_m),)

    w1 = params["w1"].astype(compute_dtype)                      # (in_dim, H)
    w2 = params["w2"].astype(compute_dtype)                      # (H, H)
    w3_row = params["w3"].reshape(1, -1).astype(compute_dtype)   # (1, H)
    b1 = params["b1"].astype(jnp.float32)                        # (1, H)
    b2 = params["b2"].astype(jnp.float32)                        # (1, H)
    b3 = params["b3"].reshape(-1).astype(jnp.float32)            # (1,) -> SMEM scalar
    H = w1.shape[1]

    x2d = x.reshape(M, Dx)   # view only; streamed as f32, cast in-kernel

    out_shape = jax.ShapeDtypeStruct((1, M), jnp.float32)
    out_spec = pl.BlockSpec((1, block_m), lambda i: (0, i))
    row_spec = lambda d: pl.BlockSpec((block_m, d), lambda i: (i, 0))
    full = lambda shape: pl.BlockSpec(shape, lambda i: (0, 0))   # resident across steps
    smem_spec = pl.BlockSpec(memory_space=pltpu.MemorySpace.SMEM)

    compiler_params = pltpu.CompilerParams(
        dimension_semantics=("parallel",),
        vmem_limit_bytes=_VMEM_LIMIT_BYTES,
    )

    if features is not None:
        Df = features.shape[-1]
        f2d = features.reshape(M, Df)
        w1x, w1f = w1[:Dx], w1[Dx:]
        out_row = pl.pallas_call(
            _mlp_kernel_xf,
            out_shape=out_shape,
            grid=grid,
            in_specs=[
                row_spec(Dx),       # x tile (f32, cast in kernel)
                row_spec(Df),       # features tile (f32, cast in kernel)
                full((Dx, H)),      # w1[:Dx]
                full((Df, H)),      # w1[Dx:]
                full((1, H)),       # b1
                full((H, H)),       # w2
                full((1, H)),       # b2
                full((1, H)),       # w3 as a row
                smem_spec,          # b3 scalar in SMEM (1-D)
            ],
            out_specs=out_spec,
            compiler_params=compiler_params,
        )(x2d, f2d, w1x, w1f, b1, w2, b2, w3_row, b3)
    else:
        out_row = pl.pallas_call(
            _mlp_kernel_x,
            out_shape=out_shape,
            grid=grid,
            in_specs=[
                row_spec(Dx),       # x tile (f32, cast in kernel)
                full((Dx, H)),      # w1
                full((1, H)),       # b1
                full((H, H)),       # w2
                full((1, H)),       # b2
                full((1, H)),       # w3 as a row
                smem_spec,          # b3 scalar in SMEM (1-D)
            ],
            out_specs=out_spec,
            compiler_params=compiler_params,
        )(x2d, w1, b1, w2, b2, w3_row, b3)

    return out_row[0, :M].reshape(B, S, 1)


def init_params(key, in_dim, hidden_size=64):
    """Deterministic init mimicking torch.nn.Linear (uniform +-1/sqrt(fan_in))."""
    ks = jax.random.split(key, 6)

    def lin(kw, kb, fan_in, fan_out):
        bound = 1.0 / jnp.sqrt(fan_in)
        w = jax.random.uniform(kw, (fan_in, fan_out), jnp.float32, -bound, bound)
        b = jax.random.uniform(kb, (1, fan_out), jnp.float32, -bound, bound)
        return w, b

    w1, b1 = lin(ks[0], ks[1], in_dim, hidden_size)
    w2, b2 = lin(ks[2], ks[3], hidden_size, hidden_size)
    w3, b3 = lin(ks[4], ks[5], hidden_size, 1)
    return {"w1": w1, "b1": b1, "w2": w2, "b2": b2, "w3": w3, "b3": b3}


def _reference(x, params, features=None):
    if features is not None:
        x = jnp.concatenate([x, features], axis=-1)
    h = jnp.maximum(x @ params["w1"] + params["b1"], 0.0)
    h = jnp.maximum(h @ params["w2"] + params["b2"], 0.0)
    return h @ params["w3"] + params["b3"]


if __name__ == "__main__":
    key = jax.random.PRNGKey(0)
    k_x, k_f, k_p, k_x2 = jax.random.split(key, 4)

    batch, seq = 2, 8
    input_size, feature_size, hidden = 16, 16, 64
    in_dim = input_size + feature_size  # concatenated last-dim size

    x = jax.random.normal(k_x, (batch, seq, input_size), jnp.float32)
    features = jax.random.normal(k_f, (batch, seq, feature_size), jnp.float32)
    params = init_params(k_p, in_dim, hidden)
    ref = _reference(x, params, features)

    # 1) Exact f32 path (tight tolerance), single full-extent tile.
    out_f32 = jax.block_until_ready(
        custom_linear_forward(x, params, features, compute_dtype=jnp.float32))
    assert out_f32.shape == (batch, seq, 1)
    assert jnp.allclose(out_f32, ref, atol=1e-4, rtol=1e-4)

    # 2) Default bf16-streaming path (looser tolerance from bf16 operands).
    out_bf16 = jax.block_until_ready(custom_linear_forward(x, params, features))
    assert out_bf16.shape == (batch, seq, 1)
    assert jnp.allclose(out_bf16, ref, atol=5e-2, rtol=5e-2)

    # 3) features=None variant + multi-tile ragged path (M not a tile multiple).
    b_big, s_big = 4, 700  # M = 2800 -> block_m = 1408, grid = 2, ragged last tile
    params_big = init_params(k_p, input_size, hidden)
    x_big = jax.random.normal(k_x2, (b_big, s_big, input_size), jnp.float32)
    ref_big = _reference(x_big, params_big)
    out_big = jax.block_until_ready(
        custom_linear_forward(x_big, params_big, compute_dtype=jnp.float32))
    assert out_big.shape == (b_big, s_big, 1)
    assert jnp.allclose(out_big, ref_big, atol=1e-4, rtol=1e-4)

    print("KERNEL_OK")
</pallas_src>

<mosaic_0001>
module attributes {stable_mosaic.version = 11 : i64} {
  func.func @_mlp_kernel_xf(%arg0: i32, %arg1: memref<16x16xf32, #tpu.memory_space<vmem>>, %arg2: memref<16x16xf32, #tpu.memory_space<vmem>>, %arg3: memref<16x64xf32, #tpu.memory_space<vmem>>, %arg4: memref<16x64xf32, #tpu.memory_space<vmem>>, %arg5: memref<1x64xf32, #tpu.memory_space<vmem>>, %arg6: memref<64x64xf32, #tpu.memory_space<vmem>>, %arg7: memref<1x64xf32, #tpu.memory_space<vmem>>, %arg8: memref<1x64xf32, #tpu.memory_space<vmem>>, %arg9: memref<1xf32, #tpu.memory_space<smem>>, %arg10: memref<1x16xf32, #tpu.memory_space<vmem>>) attributes {dimension_semantics = [#tpu.dimension_semantics<parallel>], iteration_bounds = array<i64: 1>, scalar_prefetch = 0 : i64, scratch_operands = 0 : i64, tpu.core_type = #tpu.core_type<tc>, window_params = [{transform_indices = @transform_0, window_bounds = array<i64: 16, 16>}, {transform_indices = @transform_1, window_bounds = array<i64: 16, 16>}, {pipeline_mode = #tpu.pipeline_mode<synchronous>, transform_indices = @transform_2, window_bounds = array<i64: 16, 64>}, {pipeline_mode = #tpu.pipeline_mode<synchronous>, transform_indices = @transform_3, window_bounds = array<i64: 16, 64>}, {pipeline_mode = #tpu.pipeline_mode<synchronous>, transform_indices = @transform_4, window_bounds = array<i64: 1, 64>}, {pipeline_mode = #tpu.pipeline_mode<synchronous>, transform_indices = @transform_5, window_bounds = array<i64: 64, 64>}, {pipeline_mode = #tpu.pipeline_mode<synchronous>, transform_indices = @transform_6, window_bounds = array<i64: 1, 64>}, {pipeline_mode = #tpu.pipeline_mode<synchronous>, transform_indices = @transform_7, window_bounds = array<i64: 1, 64>}, {transform_indices = @transform_8, window_bounds = array<i64: 1>}, {transform_indices = @transform_9, window_bounds = array<i64: 1, 16>}]} {
    %c0 = arith.constant 0 : index
    %c0_0 = arith.constant 0 : index
    %0 = vector.load %arg1[%c0, %c0_0] : memref<16x16xf32, #tpu.memory_space<vmem>>, vector<16x16xf32>
    %c0_1 = arith.constant 0 : index
    %c0_2 = arith.constant 0 : index
    %1 = vector.load %arg3[%c0_1, %c0_2] : memref<16x64xf32, #tpu.memory_space<vmem>>, vector<16x64xf32>
    %cst = arith.constant dense<0.000000e+00> : vector<16x64xf32>
    %2 = tpu.matmul %0, %1, %cst {dimension_numbers = #tpu.dot_dimension_numbers<[1], [0], [0], [1], [0, 0, 1, 1], [], []>} : vector<16x16xf32>, vector<16x64xf32>, vector<16x64xf32> -> vector<16x64xf32>
    %c0_3 = arith.constant 0 : index
    %c0_4 = arith.constant 0 : index
    %3 = vector.load %arg2[%c0_3, %c0_4] : memref<16x16xf32, #tpu.memory_space<vmem>>, vector<16x16xf32>
    %c0_5 = arith.constant 0 : index
    %c0_6 = arith.constant 0 : index
    %4 = vector.load %arg4[%c0_5, %c0_6] : memref<16x64xf32, #tpu.memory_space<vmem>>, vector<16x64xf32>
    %cst_7 = arith.constant dense<0.000000e+00> : vector<16x64xf32>
    %5 = tpu.matmul %3, %4, %cst_7 {dimension_numbers = #tpu.dot_dimension_numbers<[1], [0], [0], [1], [0, 0, 1, 1], [], []>} : vector<16x16xf32>, vector<16x64xf32>, vector<16x64xf32> -> vector<16x64xf32>
    %6 = arith.addf %2, %5 : vector<16x64xf32>
    %c0_8 = arith.constant 0 : index
    %c0_9 = arith.constant 0 : index
    %7 = vector.load %arg5[%c0_8, %c0_9] : memref<1x64xf32, #tpu.memory_space<vmem>>, vector<1x64xf32>
    %8 = vector.broadcast %7 : vector<1x64xf32> to vector<16x64xf32>
    %9 = arith.addf %6, %8 : vector<16x64xf32>
    %cst_10 = arith.constant 0.000000e+00 : f32
    %10 = vector.broadcast %cst_10 : f32 to vector<16x64xf32>
    %11 = arith.maximumf %9, %10 : vector<16x64xf32>
    %c0_11 = arith.constant 0 : index
    %c0_12 = arith.constant 0 : index
    %12 = vector.load %arg6[%c0_11, %c0_12] : memref<64x64xf32, #tpu.memory_space<vmem>>, vector<64x64xf32>
    %cst_13 = arith.constant dense<0.000000e+00> : vector<16x64xf32>
    %13 = tpu.matmul %11, %12, %cst_13 {dimension_numbers = #tpu.dot_dimension_numbers<[1], [0], [0], [1], [0, 0, 1, 1], [], []>} : vector<16x64xf32>, vector<64x64xf32>, vector<16x64xf32> -> vector<16x64xf32>
    %c0_14 = arith.constant 0 : index
    %c0_15 = arith.constant 0 : index
    %14 = vector.load %arg7[%c0_14, %c0_15] : memref<1x64xf32, #tpu.memory_space<vmem>>, vector<1x64xf32>
    %15 = vector.broadcast %14 : vector<1x64xf32> to vector<16x64xf32>
    %16 = arith.addf %13, %15 : vector<16x64xf32>
    %cst_16 = arith.constant 0.000000e+00 : f32
    %17 = vector.broadcast %cst_16 : f32 to vector<16x64xf32>
    %18 = arith.maximumf %16, %17 : vector<16x64xf32>
    %c0_17 = arith.constant 0 : index
    %c0_18 = arith.constant 0 : index
    %19 = vector.load %arg8[%c0_17, %c0_18] : memref<1x64xf32, #tpu.memory_space<vmem>>, vector<1x64xf32>
    %cst_19 = arith.constant dense<0.000000e+00> : vector<1x16xf32>
    %20 = tpu.matmul %19, %18, %cst_19 {dimension_numbers = #tpu.dot_dimension_numbers<[1], [1], [0], [0], [0, 0, 1, 0], [], []>} : vector<1x64xf32>, vector<16x64xf32>, vector<1x16xf32> -> vector<1x16xf32>
    %c0_20 = arith.constant 0 : index
    %21 = memref.load %arg9[%c0_20] : memref<1xf32, #tpu.memory_space<smem>>
    %22 = vector.broadcast %21 : f32 to vector<1x16xf32>
    %23 = arith.addf %20, %22 : vector<1x16xf32>
    %c0_21 = arith.constant 0 : index
    %c0_22 = arith.constant 0 : index
    %24 = vector.load %arg10[%c0_21, %c0_22] : memref<1x16xf32, #tpu.memory_space<vmem>>, vector<1x16xf32>
    tpu.vector_store %arg10[%c0_21, %c0_22], %23 {strides = array<i32>} : memref<1x16xf32, #tpu.memory_space<vmem>>, vector<1x16xf32>,
    return
  }
  func.func @transform_0(%arg0: i32) -> (i32, i32) {
    %c0_i32 = arith.constant 0 : i32
    %c0_i32_0 = arith.constant 0 : i32
    return %arg0, %c0_i32 : i32, i32
  }
  func.func @transform_1(%arg0: i32) -> (i32, i32) {
    %c0_i32 = arith.constant 0 : i32
    %c0_i32_0 = arith.constant 0 : i32
    return %arg0, %c0_i32 : i32, i32
  }
  func.func @transform_2(%arg0: i32) -> (i32, i32) {
    %c0_i32 = arith.constant 0 : i32
    %c0_i32_0 = arith.constant 0 : i32
    %c0_i32_1 = arith.constant 0 : i32
    return %c0_i32, %c0_i32_0 : i32, i32
  }
  func.func @transform_3(%arg0: i32) -> (i32, i32) {
    %c0_i32 = arith.constant 0 : i32
    %c0_i32_0 = arith.constant 0 : i32
    %c0_i32_1 = arith.constant 0 : i32
    return %c0_i32, %c0_i32_0 : i32, i32
  }
  func.func @transform_4(%arg0: i32) -> (i32, i32) {
    %c0_i32 = arith.constant 0 : i32
    %c0_i32_0 = arith.constant 0 : i32
    %c0_i32_1 = arith.constant 0 : i32
    return %c0_i32, %c0_i32_0 : i32, i32
  }
  func.func @transform_5(%arg0: i32) -> (i32, i32) {
    %c0_i32 = arith.constant 0 : i32
    %c0_i32_0 = arith.constant 0 : i32
    %c0_i32_1 = arith.constant 0 : i32
    return %c0_i32, %c0_i32_0 : i32, i32
  }
  func.func @transform_6(%arg0: i32) -> (i32, i32) {
    %c0_i32 = arith.constant 0 : i32
    %c0_i32_0 = arith.constant 0 : i32
    %c0_i32_1 = arith.constant 0 : i32
    return %c0_i32, %c0_i32_0 : i32, i32
  }
  func.func @transform_7(%arg0: i32) -> (i32, i32) {
    %c0_i32 = arith.constant 0 : i32
    %c0_i32_0 = arith.constant 0 : i32
    %c0_i32_1 = arith.constant 0 : i32
    return %c0_i32, %c0_i32_0 : i32, i32
  }
  func.func @transform_8(%arg0: i32) -> i32 {
    %c0_i32 = arith.constant 0 : i32
    %c0_i32_0 = arith.constant 0 : i32
    return %c0_i32 : i32
  }
  func.func @transform_9(%arg0: i32) -> (i32, i32) {
    %c0_i32 = arith.constant 0 : i32
    %c0_i32_0 = arith.constant 0 : i32
    return %c0_i32, %arg0 : i32, i32
  }
}

</mosaic_0001>

<bundles_post_ra>
// kernel: squeeze.1
= control target key start
LH: loop header
LB: loop body
LE: loop exit
PB: predicated region body
PF: predicated region fallthrough
CT: control target
= control target key end

     0   :  { %s77_s0 = inlined_call_operand.vmem [shape: f32[16], index: 0, kind: input, shape index: {}]   ;;  %s78_s1 = inlined_call_operand.hbm [shape: f32[2,8,1], index: 1, kind: output, shape index: {}]  }
   0x1   :  { %v6_v0 = vld [vmem:[%s77_s0] sm:$0x1] }
   0x2   :  { %2 = vsyncpa [#allocation1], 0  ;;  %7 = vst [vmem:[#allocation3] sm:$0x1] %v6_v0  ;;  %vm9_vm0 = vcmask 64512   ;;  %s59_s0 = smov 120  }
   0x3   :  { %s60_s8 = smov [#allocation0]  }
   0x4   :  { %s29_s9 = sshll.u32 %s60_s8, 4  ;;  %s30_s9 = int_to_ptr.vmem [resolvable:$true] %s29_s9 }
   0x5   :  { %s37_s10 = scalar_lea.vmem %s30_s9, 32  ;;  %p42_p1 = scmp.lt.s32.totalorder %s30_s9, %s30_s9 }
   0x6   :  { %p38_p0 = scmp.ne.s32.totalorder %s30_s9, %s37_s10  ;;  %p43_p2 = scmp.lt.s32.totalorder %s37_s10, %s37_s10 }
   0x8   :  { %p44_p3 = por %p43_p2, %p42_p1 }
   0x9   :  { %v11_v1 = vld [vmem:[#allocation3] sm:$0x1]  }
   0xa   :  { %v8_v2 = vld [vmem:[#allocation3] sm:$0x1]   ;;  %12 = vrot.lane.b32.xlu0 %v11_v1, %s59_s0  ;;  %p45_p4 = pnand %p44_p3, %p38_p0 }
   0xb   :  { %10 = vst.msk [vmem:[#allocation2] sm:$0x1] %vm9_vm0, %v8_v2  }
  0x7c   :  { %v13_v3 = vpop.permute.xlu0 %12  }
  0x7d   :  { %16 = vst.msk [vmem:[#allocation2 + $0x1] sm:$0x1] %vm9_vm0, %v13_v3  }
  0x84   :  { %v21_v4 = vld [vmem:[#allocation2] sm:$0x3] }
  0x85   :  { %24 = vst [vmem:[#allocation0] sm:$0x3] %v21_v4 }
  0x86   :  { %48 = shalt.err (!%p45_p4)
}
  0x87   :  { %32 = dma.vmem_to_hbm [thread:$0]  %s30_s9, 32, %s78_s1, [#allocation1]  }
  0x88   :  { %57 = dma.done.wait [#allocation1], 32  }
  0x89   :  { %58 = vsyncadd [#allocation1], 4294967264 }
  0x8a   :  { %34 = vsyncpa [#allocation1], 1 }

// kernel: custom_linear_forward.1
= control target key start
LH: loop header
LB: loop body
LE: loop exit
PB: predicated region body
PF: predicated region fallthrough
CT: control target
= control target key end

     0   :  { %15 = vsyncpa [#allocation4], 0  ;;  %s710_s0 = inlined_call_operand.vmem [shape: f32[16,16], index: 0, kind: input, shape index: {}]   ;;  %s711_s1 = inlined_call_operand.hbm [shape: f32[16,16], index: 1, kind: input, shape index: {}]   ;;  %s712_s2 = inlined_call_operand.vmem [shape: f32[16,64], index: 2, kind: input, shape index: {}]   ;;  %s713_s3 = inlined_call_operand.vmem [shape: f32[16,64], index: 3, kind: input, shape index: {}]   ;;  %s714_s4 = inlined_call_operand.hbm [shape: f32[1,64], index: 4, kind: input, shape index: {}]   ;;  %s715_s5 = inlined_call_operand.vmem [shape: f32[64,64], index: 5, kind: input, shape index: {}]   ;;  %s716_s6 = inlined_call_operand.hbm [shape: f32[1,64], index: 6, kind: input, shape index: {}]   ;;  %s717_s7 = inlined_call_operand.vmem [shape: f32[1,64], index: 7, kind: input, shape index: {}]   ;;  %s718_s8 = inlined_call_operand.<no memory space> [shape: f32[1], index: 8, kind: input, shape index: {}]   ;;  %s719_s9 = inlined_call_operand.vmem [shape: f32[1,16], index: 9, kind: output, shape index: {}]  }
   0x1   :  { %16 = vsyncpa [#allocation6], 0  ;;  %s584_s30 = smov [#allocation5]   ;;  %s585_s11 = smov [#allocation3]  }
   0x2   :  { %s41_s10 = sshll.u32 %s584_s30, 4  ;;  %s24_s12 = sshll.u32 %s585_s11, 4  ;;  %s42_s10 = int_to_ptr.vmem [resolvable:$true] %s41_s10  ;;  %s25_s12 = int_to_ptr.vmem [resolvable:$true] %s24_s12 }
   0x3   :  { %s528_s13 = scalar_lea.vmem %s42_s10, 16  ;;  %s532_s14 = scalar_lea.vmem %s42_s10, 32 }
   0x4   :  { %p529_p0 = scmp.ne.s32.totalorder %s42_s10, %s528_s13  ;;  %p533_p1 = scmp.lt.s32.totalorder %s42_s10, %s42_s10 }
   0x5   :  { %p534_p2 = scmp.lt.s32.totalorder %s532_s14, %s528_s13 }
   0x7   :  { %p535_p3 = por %p534_p2, %p533_p1 }
   0x9   :  { %p536_p4 = pnand %p535_p3, %p529_p0 }
   0xb   :  { %539 = shalt.err (!%p536_p4)
}
   0xc   :  { %44 = dma.hbm_to_vmem [thread:$0]  %s714_s4, 16, %s42_s10, [#allocation6]  }
   0xd   :  { %s548_s17 = scalar_lea.vmem %s25_s12, 256  ;;  %p553_p6 = scmp.lt.s32.totalorder %s25_s12, %s25_s12 }
   0xe   :  { %p549_p5 = scmp.ne.s32.totalorder %s25_s12, %s548_s17  ;;  %p554_p7 = scmp.lt.s32.totalorder %s548_s17, %s548_s17 }
  0x10   :  { %p555_p8 = por %p554_p7, %p553_p6 }
  0x12   :  { %p556_p9 = pnand %p555_p8, %p549_p5 }
  0x14   :  { %559 = shalt.err (!%p556_p9)
}
  0x15   :  { %s586_s18 = smov 128   ;;  %s587_s19 = smov 8  }
  0x16   :  { %30 = dma.hbm_to_vmem [thread:$0]  %s711_s1, 256, %s25_s12, [#allocation4], %s586_s18, %s586_s18, %s587_s19  }
  0x17   :  { %s588_s22 = smov [#allocation7]  }
  0x18   :  { %s53_s23 = sshll.u32 %s588_s22, 4  ;;  %s54_s23 = int_to_ptr.vmem [resolvable:$true] %s53_s23 }
  0x19   :  { %s568_s24 = scalar_lea.vmem %s54_s23, 16  ;;  %s572_s25 = scalar_lea.vmem %s54_s23, 32 }
  0x1a   :  { %p569_p10 = scmp.ne.s32.totalorder %s54_s23, %s568_s24  ;;  %p573_p11 = scmp.lt.s32.totalorder %s54_s23, %s54_s23 }
  0x1b   :  { %p574_p12 = scmp.lt.s32.totalorder %s572_s25, %s568_s24 }
  0x1d   :  { %p575_p13 = por %p574_p12, %p573_p11 }
  0x1f   :  { %p576_p0 = pnand %p575_p13, %p569_p10 }
  0x21   :  { %579 = shalt.err (!%p576_p0)
}
  0x22   :  { %56 = dma.hbm_to_vmem [thread:$0]  %s716_s6, 16, %s54_s23, [#allocation6]  }
  0x23   :  { %580 = dma.done.wait [#allocation4], 256  }
  0x24   :  { %581 = vsyncadd [#allocation4], 4294967040 }
  0x25   :  { %582 = dma.done.wait [#allocation6], 32  }
  0x26   :  { %583 = vsyncadd [#allocation6], 4294967264  ;;  %vm78_vm0 = vcmask 130048   ;;  %v77_v0 = vld [vmem:[%s713_s3 + $0x8] sm:$0xff]  ;;  %v76_v1 = vld [vmem:[%s713_s3] sm:$0xff]  ;;  %vm267_vm1 = vcmask 523264   ;;  %v353_v36 = vstv %s718_s8 }
  0x27   :  { %v74_v2 = vld [vmem:[#allocation3] sm:$0xff]  ;;  %473 = vmatprep.subr.mxu1 %v77_v0  ;;  %v75_v3 = vld [vmem:[#allocation3 + $0x8] sm:$0xff]  ;;  %v259_v5 = vld [vmem:[%s715_s5 + $0x38] sm:$0xff]  ;;  %v589_v27 = vmov 0.0   ;;  %vm590_vm2 = vmmov 0   ;;  %vm433_vm3 = vcmask 122880  }
  0x28   :  { %477 = vmatprep.mubr.msk.f32.mxu1 %vm78_vm0, %v74_v2  ;;  %474 = vmatpush3.msra.mxu1 %v77_v0  ;;  %v73_v4 = vld [vmem:[%s712_s2 + $0x8] sm:$0xff]  ;;  %v70_v6 = vld [vmem:[%s710_s0] sm:$0xff]  ;;  %v258_v9 = vld [vmem:[%s715_s5 + $0x30] sm:$0xff] }
  0x29   :  { %475 = vmatprep.subr.mxu1 %v76_v1  ;;  %487 = vmatprep.subr.mxu0 %v259_v5  ;;  %v72_v7 = vld [vmem:[%s712_s2] sm:$0xff]  ;;  %v71_v8 = vld [vmem:[%s710_s0 + $0x8] sm:$0xff]  ;;  %v255_v12 = vld [vmem:[%s715_s5 + $0x18] sm:$0xff] }
  0x2a   :  { %476 = vmatpush3.msra.mxu1 %v76_v1  ;;  %488 = vmatpush3.msra.mxu0 %v259_v5  ;;  %v257_v10 = vld [vmem:[%s715_s5 + $0x28] sm:$0xff]  ;;  %v256_v11 = vld [vmem:[%s715_s5 + $0x20] sm:$0xff]  ;;  %v254_v13 = vld [vmem:[%s715_s5 + $0x10] sm:$0xff] }
  0x2b   :  { %478 = vmatmul.mubr.msk.f32.vlgmr.msra.gmra.mxu1 %vm78_vm0, %v75_v3  ;;  %480 = vmatprep.subr.mxu1 %v73_v4  ;;  %v253_v14 = vld [vmem:[%s715_s5 + $0x8] sm:$0xff]  ;;  %v252_v15 = vld [vmem:[%s715_s5] sm:$0xff]  ;;  %v445_v20 = vld [vmem:[#allocation5] ss:$0 sm:$0xff] }
  0x2c   :  { %481 = vmatpush3.msra.mxu1 %v73_v4  ;;  %484 = vmatprep.mubr.msk.f32.mxu1 %vm78_vm0, %v70_v6  ;;  %v446_v28 = vld [vmem:[#allocation7] ss:$0 sm:$0xff]  ;;  %v351_v35 = vld [vmem:[%s717_s7] sm:$0x1] }
  0x2d   :  { %482 = vmatprep.subr.mxu1 %v72_v7  ;;  %489 = vmatprep.subr.mxu0 %v258_v9 }
  0x2e   :  { %483 = vmatpush3.msra.mxu1 %v72_v7  ;;  %490 = vmatpush3.msra.mxu0 %v258_v9 }
  0x2f   :  { %485 = vmatmul.mubr.msk.f32.vlgmr.msra.gmra.mxu1 %vm78_vm0, %v71_v8  ;;  %491 = vmatprep.subr.mxu0 %v257_v10 }
  0x30   :  { %492 = vmatpush3.msra.mxu0 %v257_v10  ;;  %506 = vmatprep.subr.mxu1 %v589_v27 }
  0x31   :  { %493 = vmatprep.subr.mxu0 %v256_v11  ;;  %510 = vmatprep.mubr.msk.f32.mxu1 %vm590_vm2, %v589_v27 }
  0x32   :  { %494 = vmatpush3.msra.mxu0 %v256_v11 }
  0x33   :  { %495 = vmatprep.subr.mxu0 %v255_v12 }
  0x34   :  { %496 = vmatpush3.msra.mxu0 %v255_v12 }
  0x35   :  { %497 = vmatprep.subr.mxu0 %v254_v13 }
  0x36   :  { %498 = vmatpush3.msra.mxu0 %v254_v13 }
  0x37   :  { %499 = vmatprep.subr.mxu0 %v253_v14 }
  0x38   :  { %500 = vmatpush3.msra.mxu0 %v253_v14 }
  0x39   :  { %501 = vmatprep.subr.mxu0 %v252_v15 }
  0x3a   :  { %502 = vmatpush3.msra.mxu0 %v252_v15 }
  0xeb   :  { %v479_v16 = vpop.f32.mrf.mxu1 }
  0xed   :  { %v151_v17 = vpop.f32.mrf.mxu1 }
  0xef   :  { %v486_v18 = vpop.f32.mrf.mxu1 }
  0xf0   :  { %v238_v19 = vadd.f32 %v486_v18, %v479_v16 }
  0xf1   :  { %v232_v21 = vpop.f32.mrf.mxu1 }
  0xf2   :  { %v233_v22 = vadd.f32 %v232_v21, %v151_v17  ;;  %v249_v23 = vadd.f32 %v445_v20, %v238_v19 }
  0xf4   :  { %v248_v24 = vadd.f32 %v445_v20, %v233_v22  ;;  %v251_v26 = vmax.f32 %v249_v23, 0.0 }
  0xf6   :  { %v250_v25 = vmax.f32 %v248_v24, 0.0 }
  0xf8   :  { %503 = vmatprep.mubr.msk.f32.mxu0 %vm267_vm1, %v250_v25 }
  0xf9   :  { %504 = vmatmul.mubr.msk.f32.vlgmr.msra.gmra.mxu0 %vm267_vm1, %v251_v26 }
 0x1b9   :  { %v505_v29 = vpop.f32.mrf.mxu0 }
 0x1ba   :  { %v346_v30 = vadd.f32 %v505_v29, %v446_v28 }
 0x1bb   :  { %v340_v31 = vpop.f32.mrf.mxu0 }
 0x1bc   :  { %v350_v32 = vmax.f32 %v346_v30, 0.0  ;;  %v341_v33 = vadd.f32 %v446_v28, %v340_v31 }
 0x1be   :  { %507 = vmatpush3.xpose.msk.msra.mxu1 %vm267_vm1, %v350_v32  ;;  %v349_v34 = vmax.f32 %v341_v33, 0.0 }
 0x1bf   :  { %508 = vmatprep.subr.mxu1 %v589_v27 }
 0x1c2   :  { %509 = vmatpush3.xpose.msk.msra.mxu1 %vm267_vm1, %v349_v34 }
 0x1c5   :  { %511 = vmatmul.mubr.msk.f32.vlgmr.msra.gmra.mxu1 %vm267_vm1, %v351_v35 }
 0x285   :  { %v429_v37 = vpop.f32.mrf.mxu1 }
 0x286   :  { %v430_v38 = vadd.f32 %v429_v37, %v353_v36 }
 0x287   :  { %v512_v39 = vpop.f32.mrf.mxu1 }
 0x288   :  { %434 = vst.msk [vmem:[%s719_s9] sm:$0x1] %vm433_vm3, %v430_v38 }
 0x289   :  { %439 = vsyncpa [#allocation4], 1 }
 0x28a   :  { %440 = vsyncpa [#allocation6], 1 }

</bundles_post_ra>
